<compile_context>
chip_gen: v7x
topology: tpu7x:2x2x1
jax: 0.10.0
libtpu: 0.0.40
codegen_flags: <defaults>
</compile_context>

<pallas_src>
import functools

import jax
import jax.numpy as jnp
from jax.experimental import pallas as pl
from jax.experimental.pallas import tpu as pltpu


def _round_up(x, m):
    return (x + m - 1) // m * m


def _chamfer_kernel(x_ref, x2_ref, yt_ref, y2_ref, d1_ref, d2_ref, acc1_ref,
                    *, tn, tm, chunk, n_chunks):
    n = pl.program_id(2)
    m = pl.program_id(3)

    # Fresh d1 accumulator for each (b, split, n) at the first M block.
    @pl.when(m == 0)
    def _():
        acc1_ref[...] = jnp.full(acc1_ref.shape, jnp.inf, jnp.float32)

    # Fresh resident d2 row block for each (b, split) at its first (n, m) step.
    @pl.when(jnp.logical_and(n == 0, m == 0))
    def _():
        d2_ref[...] = jnp.full(d2_ref.shape, jnp.inf, jnp.float32)

    neg2x = -2.0 * x_ref[...]       # (TN, D); -2 folded into the MXU operand
    x2 = x2_ref[...]                # (TN, 1) precomputed ||x||^2

    # Walk the (TN, TM) tile in (TN, CHUNK) lane chunks: each chunk's squared
    # distances are produced, min-folded into the accumulators and dropped, so
    # the full distance tile is never materialized (no spill traffic).
    for c in range(n_chunks):
        c0 = c * chunk
        ytc = yt_ref[:, c0:c0 + chunk]          # (D, CHUNK)
        y2c = y2_ref[:, c0:c0 + chunk]          # (1, CHUNK) precomputed ||y||^2

        xy = jnp.dot(neg2x, ytc, preferred_element_type=jnp.float32)
        sq = xy + x2 + y2c                      # (TN, CHUNK) squared dists

        # d1 path: fold CHUNK lanes down to 128 with VPU mins over static
        # 128-aligned slices (no relayout), then min into the (TN, 128)
        # accumulator; the 128->1 XLU reduce is deferred to the last m block.
        lane_min = sq[:, 0:128]
        for k in range(1, chunk // 128):
            lane_min = jnp.minimum(lane_min, sq[:, 128 * k:128 * (k + 1)])
        acc1_ref[...] = jnp.minimum(acc1_ref[...], lane_min)

        # d2 path: fold TN sublane rows down to 8 with VPU mins over static
        # 8-aligned slices, then min into the resident (8, M_pad) block; the
        # 8->1 sublane reduce is deferred to the wrapper.
        row_min = sq[0:8, :]
        for r in range(1, tn // 8):
            row_min = jnp.minimum(row_min, sq[8 * r:8 * (r + 1), :])
        off = pl.multiple_of(m * tm + c0, 128)
        d2_ref[:, pl.ds(off, chunk)] = jnp.minimum(
            d2_ref[:, pl.ds(off, chunk)], row_min)

    # Single cross-lane reduce per (b, split, n), after the last M block.
    @pl.when(m == pl.num_programs(3) - 1)
    def _():
        d1_ref[...] = jnp.min(acc1_ref[...], axis=1, keepdims=True)


def chamfer_distance_l1(xyz1, xyz2, ignore_zeros=False, *,
                        tile_n=128, tile_m=8192, chunk_m=256, n_splits=None):
    """L1 Chamfer distance: (mean(sqrt(d1)) + mean(sqrt(d2))) / 2."""
    B, N, D = xyz1.shape
    B2, M, D2 = xyz2.shape
    assert B == B2 and D == D2

    # TODO(synk): ignore_zeros=True (filtering all-zero points when B == 1)
    # produces data-dependent shapes and is not implemented in this
    # static-shape kernel.
    del ignore_zeros

    xyz1 = xyz1.astype(jnp.float32)
    xyz2 = xyz2.astype(jnp.float32)

    # Shared per-batch centering: pairwise distances are translation
    # invariant; this reduces cancellation in the expanded-form distances.
    center = (jnp.sum(xyz1, axis=1, keepdims=True) +
              jnp.sum(xyz2, axis=1, keepdims=True)) / float(N + M)
    xyz1 = xyz1 - center
    xyz2 = xyz2 - center

    # Tile sizes rounded to legal (8, 128) multiples regardless of user args.
    TN = _round_up(min(tile_n, N), 8)
    CHUNK = _round_up(min(chunk_m, M), 128)
    TM = _round_up(min(tile_m, M), CHUNK)
    n_chunks = TM // CHUNK

    # Megacore: if the batch alone cannot keep two TensorCores busy, split the
    # N-tile axis into an outer parallel axis; per-split partial d2 rows are
    # min-reduced in the wrapper.  No effect on single-core chips.
    if n_splits is None:
        n_splits = 2 if (B == 1 and _round_up(N, TN) // TN >= 2) else 1
    S = max(1, int(n_splits))

    N_pad = _round_up(N, TN * S)
    M_pad = _round_up(M, TM)
    nn = N_pad // (TN * S)          # N tiles per split
    nm = M_pad // TM

    # Pad with a large coordinate sentinel so padded points are never the
    # nearest neighbour of any real point (padded rows/cols are sliced off
    # before the means).  Distance path stays f32 so the sentinel is safe.
    PAD_COORD = 1e8
    if N_pad != N:
        xyz1 = jnp.concatenate(
            [xyz1, jnp.full((B, N_pad - N, D), PAD_COORD, jnp.float32)], axis=1)
    if M_pad != M:
        xyz2 = jnp.concatenate(
            [xyz2, jnp.full((B, M_pad - M, D), PAD_COORD, jnp.float32)], axis=1)

    # Precompute squared norms once (XLA) instead of per grid step.
    x2 = jnp.sum(xyz1 * xyz1, axis=-1, keepdims=True)        # (B, N_pad, 1)
    y2 = jnp.sum(xyz2 * xyz2, axis=-1)[:, None, :]           # (B, 1, M_pad)
    # Lane-dense layout for y: (B, D, M_pad) so the MXU sees (TN,D)@(D,CHUNK).
    yt = jnp.transpose(xyz2, (0, 2, 1))

    kernel = functools.partial(_chamfer_kernel, tn=TN, tm=TM,
                               chunk=CHUNK, n_chunks=n_chunks)

    d1_sq, d2_sq = pl.pallas_call(
        kernel,
        out_shape=(
            jax.ShapeDtypeStruct((B, N_pad, 1), jnp.float32),
            jax.ShapeDtypeStruct((B, S, 8, M_pad), jnp.float32),
        ),
        grid=(B, S, nn, nm),
        in_specs=[
            pl.BlockSpec((None, TN, D), lambda b, s, n, m: (b, s * nn + n, 0)),
            pl.BlockSpec((None, TN, 1), lambda b, s, n, m: (b, s * nn + n, 0)),
            pl.BlockSpec((None, D, TM), lambda b, s, n, m: (b, 0, m)),
            pl.BlockSpec((None, 1, TM), lambda b, s, n, m: (b, 0, m)),
        ],
        out_specs=(
            pl.BlockSpec((None, TN, 1), lambda b, s, n, m: (b, s * nn + n, 0)),
            pl.BlockSpec((None, None, 8, M_pad),
                         lambda b, s, n, m: (b, s, 0, 0)),
        ),
        scratch_shapes=[pltpu.VMEM((TN, 128), jnp.float32)],
        compiler_params=pltpu.CompilerParams(
            # n / m tile axes carry running-min accumulators (d2 across n,
            # acc1/d1 across m) so they must stay "arbitrary"; the batch and
            # N-split axes are parallel (megacore-safe).
            dimension_semantics=("parallel", "parallel", "arbitrary",
                                 "arbitrary"),
        ),
    )(xyz1, x2, yt, y2)

    d1 = d1_sq[:, :N, 0]                          # (B, N) min squared dists
    d2 = jnp.min(d2_sq, axis=(1, 2))[:, :M]       # fold splits + 8 rows
    d1 = jnp.sqrt(jnp.maximum(d1, 0.0))
    d2 = jnp.sqrt(jnp.maximum(d2, 0.0))
    return (jnp.mean(d1) + jnp.mean(d2)) * 0.5


def _reference(xyz1, xyz2):
    # Pure-JAX reference matching the torch module's forward.
    diff = xyz1[:, :, None, :] - xyz2[:, None, :, :]      # (B, N, M, D)
    sq = jnp.sum(diff * diff, axis=-1)                    # (B, N, M)
    d1 = jnp.sqrt(jnp.min(sq, axis=2))
    d2 = jnp.sqrt(jnp.min(sq, axis=1))
    return (jnp.mean(d1) + jnp.mean(d2)) * 0.5


if __name__ == "__main__":
    key = jax.random.PRNGKey(0)
    k1, k2, k3, k4, k5, k6 = jax.random.split(key, 6)

    # Small single-tile test.
    B, N, M, D = 2, 16, 24, 3
    xyz1 = jax.random.normal(k1, (B, N, D), dtype=jnp.float32)
    xyz2 = jax.random.normal(k2, (B, M, D), dtype=jnp.float32)
    out = chamfer_distance_l1(xyz1, xyz2)
    jax.block_until_ready(out)
    ref = _reference(xyz1, xyz2)
    assert jnp.allclose(out, ref, atol=1e-4, rtol=1e-4), (out, ref)

    # Multi-tile test: running-min accumulation across both tile axes, the
    # in-kernel multi-chunk loop, the N-split (megacore) path, and padding.
    B2_, N2, M2 = 1, 200, 300
    xyz1b = jax.random.normal(k3, (B2_, N2, D), dtype=jnp.float32)
    xyz2b = jax.random.normal(k4, (B2_, M2, D), dtype=jnp.float32)
    out2 = chamfer_distance_l1(xyz1b, xyz2b, tile_n=64, tile_m=256, chunk_m=128)
    jax.block_until_ready(out2)
    ref2 = _reference(xyz1b, xyz2b)
    assert jnp.allclose(out2, ref2, atol=1e-4, rtol=1e-4), (out2, ref2)

    # Batched default-parameter path: multiple N tiles, 2-chunk loop, padding.
    B3, N3, M3 = 2, 150, 260
    xyz1c = jax.random.normal(k5, (B3, N3, D), dtype=jnp.float32)
    xyz2c = jax.random.normal(k6, (B3, M3, D), dtype=jnp.float32)
    out3 = chamfer_distance_l1(xyz1c, xyz2c)
    jax.block_until_ready(out3)
    ref3 = _reference(xyz1c, xyz2c)
    assert jnp.allclose(out3, ref3, atol=1e-4, rtol=1e-4), (out3, ref3)

    print("KERNEL_OK")
</pallas_src>

<mosaic_0001>
module attributes {stable_mosaic.version = 11 : i64} {
  func.func @_chamfer_kernel(%arg0: i32, %arg1: i32, %arg2: i32, %arg3: i32, %arg4: memref<1x16x3xf32, #tpu.memory_space<vmem>>, %arg5: memref<1x16x1xf32, #tpu.memory_space<vmem>>, %arg6: memref<1x3x128xf32, #tpu.memory_space<vmem>>, %arg7: memref<1x1x128xf32, #tpu.memory_space<vmem>>, %arg8: memref<1x16x1xf32, #tpu.memory_space<vmem>>, %arg9: memref<1x1x8x128xf32, #tpu.memory_space<vmem>>, %arg10: memref<16x128xf32, #tpu.memory_space<vmem>>) attributes {dimension_semantics = [#tpu.dimension_semantics<parallel>, #tpu.dimension_semantics<parallel>, #tpu.dimension_semantics<arbitrary>, #tpu.dimension_semantics<arbitrary>], iteration_bounds = array<i64: 2, 1, 1, 1>, scalar_prefetch = 0 : i64, scratch_operands = 1 : i64, tpu.core_type = #tpu.core_type<tc>, window_params = [{transform_indices = @transform_0, window_bounds = array<i64: 1, 16, 3>}, {transform_indices = @transform_1, window_bounds = array<i64: 1, 16, 1>}, {transform_indices = @transform_2, window_bounds = array<i64: 1, 3, 128>}, {transform_indices = @transform_3, window_bounds = array<i64: 1, 1, 128>}, {transform_indices = @transform_4, window_bounds = array<i64: 1, 16, 1>}, {transform_indices = @transform_5, window_bounds = array<i64: 1, 1, 8, 128>}]} {
    %c0_i32 = arith.constant 0 : i32
    %0 = arith.cmpi eq, %arg3, %c0_i32 : i32
    %1 = arith.extui %0 : i1 to i32
    %c0_i32_0 = arith.constant 0 : i32
    %2 = arith.cmpi ne, %1, %c0_i32_0 : i32
    scf.if %2 {
      %cst_29 = arith.constant 0x7F800000 : f32
      %43 = vector.broadcast %cst_29 : f32 to vector<16x128xf32>
      %c0_30 = arith.constant 0 : index
      %c0_31 = arith.constant 0 : index
      %44 = vector.load %arg10[%c0_30, %c0_31] : memref<16x128xf32, #tpu.memory_space<vmem>>, vector<16x128xf32>
      tpu.vector_store %arg10[%c0_30, %c0_31], %43 {strides = array<i32>} : memref<16x128xf32, #tpu.memory_space<vmem>>, vector<16x128xf32>,
    } else {
    }
    %c0_i32_1 = arith.constant 0 : i32
    %3 = arith.cmpi eq, %arg2, %c0_i32_1 : i32
    %c0_i32_2 = arith.constant 0 : i32
    %4 = arith.cmpi eq, %arg3, %c0_i32_2 : i32
    %5 = arith.andi %3, %4 : i1
    %6 = arith.extui %5 : i1 to i32
    %c0_i32_3 = arith.constant 0 : i32
    %7 = arith.cmpi ne, %6, %c0_i32_3 : i32
    scf.if %7 {
      %cst_29 = arith.constant 0x7F800000 : f32
      %43 = vector.broadcast %cst_29 : f32 to vector<8x128xf32>
      %c0_30 = arith.constant 0 : index
      %c0_31 = arith.constant 0 : index
      %c0_32 = arith.constant 0 : index
      %c0_33 = arith.constant 0 : index
      %44 = vector.load %arg9[%c0_30, %c0_31, %c0_32, %c0_33] : memref<1x1x8x128xf32, #tpu.memory_space<vmem>>, vector<1x1x8x128xf32>
      %45 = vector.shape_cast %44 : vector<1x1x8x128xf32> to vector<8x128xf32>
      %46 = vector.shape_cast %43 : vector<8x128xf32> to vector<1x1x8x128xf32>
      tpu.vector_store %arg9[%c0_30, %c0_31, %c0_32, %c0_33], %46 {strides = array<i32>} : memref<1x1x8x128xf32, #tpu.memory_space<vmem>>, vector<1x1x8x128xf32>,
    } else {
    }
    %c0 = arith.constant 0 : index
    %c0_4 = arith.constant 0 : index
    %c0_5 = arith.constant 0 : index
    %8 = vector.load %arg4[%c0, %c0_4, %c0_5] : memref<1x16x3xf32, #tpu.memory_space<vmem>>, vector<1x16x3xf32>
    %9 = vector.shape_cast %8 : vector<1x16x3xf32> to vector<16x3xf32>
    %cst = arith.constant -2.000000e+00 : f32
    %10 = vector.broadcast %cst : f32 to vector<16x3xf32>
    %11 = arith.mulf %10, %9 : vector<16x3xf32>
    %c0_6 = arith.constant 0 : index
    %c0_7 = arith.constant 0 : index
    %c0_8 = arith.constant 0 : index
    %12 = vector.load %arg5[%c0_6, %c0_7, %c0_8] : memref<1x16x1xf32, #tpu.memory_space<vmem>>, vector<1x16x1xf32>
    %13 = vector.shape_cast %12 : vector<1x16x1xf32> to vector<16x1xf32>
    %c0_9 = arith.constant 0 : index
    %c0_10 = arith.constant 0 : index
    %c0_11 = arith.constant 0 : index
    %14 = vector.load %arg6[%c0_9, %c0_10, %c0_11] : memref<1x3x128xf32, #tpu.memory_space<vmem>>, vector<1x3x128xf32>
    %15 = vector.shape_cast %14 : vector<1x3x128xf32> to vector<3x128xf32>
    %c0_12 = arith.constant 0 : index
    %c0_13 = arith.constant 0 : index
    %c0_14 = arith.constant 0 : index
    %16 = vector.load %arg7[%c0_12, %c0_13, %c0_14] : memref<1x1x128xf32, #tpu.memory_space<vmem>>, vector<1x1x128xf32>
    %17 = vector.shape_cast %16 : vector<1x1x128xf32> to vector<1x128xf32>
    %cst_15 = arith.constant dense<0.000000e+00> : vector<16x128xf32>
    %18 = tpu.matmul %11, %15, %cst_15 {dimension_numbers = #tpu.dot_dimension_numbers<[1], [0], [0], [1], [0, 0, 1, 1], [], []>} : vector<16x3xf32>, vector<3x128xf32>, vector<16x128xf32> -> vector<16x128xf32>
    %19 = vector.broadcast %13 : vector<16x1xf32> to vector<16x128xf32>
    %20 = arith.addf %18, %19 : vector<16x128xf32>
    %21 = vector.broadcast %17 : vector<1x128xf32> to vector<16x128xf32>
    %22 = arith.addf %20, %21 : vector<16x128xf32>
    %c0_16 = arith.constant 0 : index
    %c0_17 = arith.constant 0 : index
    %23 = vector.load %arg10[%c0_16, %c0_17] : memref<16x128xf32, #tpu.memory_space<vmem>>, vector<16x128xf32>
    %24 = arith.minimumf %23, %22 : vector<16x128xf32>
    %c0_18 = arith.constant 0 : index
    %c0_19 = arith.constant 0 : index
    %25 = vector.load %arg10[%c0_18, %c0_19] : memref<16x128xf32, #tpu.memory_space<vmem>>, vector<16x128xf32>
    tpu.vector_store %arg10[%c0_18, %c0_19], %24 {strides = array<i32>} : memref<16x128xf32, #tpu.memory_space<vmem>>, vector<16x128xf32>,
    %26 = vector.extract_strided_slice %22 {offsets = [0, 0], sizes = [8, 128], strides = [1, 1]} : vector<16x128xf32> to vector<8x128xf32>
    %27 = vector.extract_strided_slice %22 {offsets = [8, 0], sizes = [8, 128], strides = [1, 1]} : vector<16x128xf32> to vector<8x128xf32>
    %28 = arith.minimumf %26, %27 : vector<8x128xf32>
    %c128_i32 = arith.constant 128 : i32
    %29 = arith.muli %arg3, %c128_i32 : i32
    %c0_i32_20 = arith.constant 0 : i32
    %30 = arith.addi %29, %c0_i32_20 : i32
    %31 = tpu.assume_multiple %30, 128 : i32
    %c0_21 = arith.constant 0 : index
    %c0_22 = arith.constant 0 : index
    %c0_23 = arith.constant 0 : index
    %32 = arith.index_cast %31 : i32 to index
    %33 = vector.load %arg9[%c0_21, %c0_22, %c0_23, %32] : memref<1x1x8x128xf32, #tpu.memory_space<vmem>>, vector<1x1x8x128xf32>
    %34 = vector.shape_cast %33 : vector<1x1x8x128xf32> to vector<8x128xf32>
    %35 = arith.minimumf %34, %28 : vector<8x128xf32>
    %c0_24 = arith.constant 0 : index
    %c0_25 = arith.constant 0 : index
    %c0_26 = arith.constant 0 : index
    %36 = arith.index_cast %31 : i32 to index
    %37 = vector.load %arg9[%c0_24, %c0_25, %c0_26, %36] : memref<1x1x8x128xf32, #tpu.memory_space<vmem>>, vector<1x1x8x128xf32>
    %38 = vector.shape_cast %37 : vector<1x1x8x128xf32> to vector<8x128xf32>
    %39 = vector.shape_cast %35 : vector<8x128xf32> to vector<1x1x8x128xf32>
    tpu.vector_store %arg9[%c0_24, %c0_25, %c0_26, %36], %39 {strides = array<i32>} : memref<1x1x8x128xf32, #tpu.memory_space<vmem>>, vector<1x1x8x128xf32>,
    %c0_i32_27 = arith.constant 0 : i32
    %40 = arith.cmpi eq, %arg3, %c0_i32_27 : i32
    %41 = arith.extui %40 : i1 to i32
    %c0_i32_28 = arith.constant 0 : i32
    %42 = arith.cmpi ne, %41, %c0_i32_28 : i32
    scf.if %42 {
      %c0_29 = arith.constant 0 : index
      %c0_30 = arith.constant 0 : index
      %43 = vector.load %arg10[%c0_29, %c0_30] : memref<16x128xf32, #tpu.memory_space<vmem>>, vector<16x128xf32>
      %cst_31 = arith.constant dense<0x7F800000> : vector<16xf32>
      %44 = vector.multi_reduction <minimumf>, %43, %cst_31 [1] : vector<16x128xf32> to vector<16xf32>
      %45 = vector.shape_cast %44 : vector<16xf32> to vector<16x1xf32>
      %c0_32 = arith.constant 0 : index
      %c0_33 = arith.constant 0 : index
      %c0_34 = arith.constant 0 : index
      %46 = vector.load %arg8[%c0_32, %c0_33, %c0_34] : memref<1x16x1xf32, #tpu.memory_space<vmem>>, vector<1x16x1xf32>
      %47 = vector.shape_cast %46 : vector<1x16x1xf32> to vector<16x1xf32>
      %48 = vector.shape_cast %45 : vector<16x1xf32> to vector<1x16x1xf32>
      tpu.vector_store %arg8[%c0_32, %c0_33, %c0_34], %48 {strides = array<i32>} : memref<1x16x1xf32, #tpu.memory_space<vmem>>, vector<1x16x1xf32>,
    } else {
    }
    return
  }
  func.func @transform_0(%arg0: i32, %arg1: i32, %arg2: i32, %arg3: i32) -> (i32, i32, i32) {
    %c1_i32 = arith.constant 1 : i32
    %0 = arith.muli %arg1, %c1_i32 : i32
    %1 = arith.addi %0, %arg2 : i32
    %c0_i32 = arith.constant 0 : i32
    %c0_i32_0 = arith.constant 0 : i32
    return %arg0, %1, %c0_i32 : i32, i32, i32
  }
  func.func @transform_1(%arg0: i32, %arg1: i32, %arg2: i32, %arg3: i32) -> (i32, i32, i32) {
    %c1_i32 = arith.constant 1 : i32
    %0 = arith.muli %arg1, %c1_i32 : i32
    %1 = arith.addi %0, %arg2 : i32
    %c0_i32 = arith.constant 0 : i32
    %c0_i32_0 = arith.constant 0 : i32
    return %arg0, %1, %c0_i32 : i32, i32, i32
  }
  func.func @transform_2(%arg0: i32, %arg1: i32, %arg2: i32, %arg3: i32) -> (i32, i32, i32) {
    %c0_i32 = arith.constant 0 : i32
    %c0_i32_0 = arith.constant 0 : i32
    return %arg0, %c0_i32, %arg3 : i32, i32, i32
  }
  func.func @transform_3(%arg0: i32, %arg1: i32, %arg2: i32, %arg3: i32) -> (i32, i32, i32) {
    %c0_i32 = arith.constant 0 : i32
    %c0_i32_0 = arith.constant 0 : i32
    return %arg0, %c0_i32, %arg3 : i32, i32, i32
  }
  func.func @transform_4(%arg0: i32, %arg1: i32, %arg2: i32, %arg3: i32) -> (i32, i32, i32) {
    %c1_i32 = arith.constant 1 : i32
    %0 = arith.muli %arg1, %c1_i32 : i32
    %1 = arith.addi %0, %arg2 : i32
    %c0_i32 = arith.constant 0 : i32
    %c0_i32_0 = arith.constant 0 : i32
    return %arg0, %1, %c0_i32 : i32, i32, i32
  }
  func.func @transform_5(%arg0: i32, %arg1: i32, %arg2: i32, %arg3: i32) -> (i32, i32, i32, i32) {
    %c0_i32 = arith.constant 0 : i32
    %c0_i32_0 = arith.constant 0 : i32
    %c0_i32_1 = arith.constant 0 : i32
    return %arg0, %arg1, %c0_i32, %c0_i32_0 : i32, i32, i32, i32
  }
}

</mosaic_0001>

<bundles_post_ra>
// kernel: tpu_custom_call.1
= control target key start
LH: loop header
LB: loop body
LE: loop exit
PB: predicated region body
PF: predicated region fallthrough
CT: control target
= control target key end

     0   :  { %11 = vsyncpa [#allocation4], 0  ;;  %s1068_s0 = inlined_call_operand.vmem [shape: f32[2,16,3], index: 0, kind: input, shape index: {}]   ;;  %s1069_s1 = inlined_call_operand.vmem [shape: f32[2,16,1], index: 1, kind: input, shape index: {}]   ;;  %s1070_s2 = inlined_call_operand.vmem [shape: f32[2,3,128], index: 2, kind: input, shape index: {}]   ;;  %s1071_s3 = inlined_call_operand.vmem [shape: f32[2,1,128], index: 3, kind: input, shape index: {}]   ;;  %s1072_s4 = inlined_call_operand.vmem [shape: f32[2,16,1], index: 4, kind: output, shape index: {0}]   ;;  %s1073_s5 = inlined_call_operand.hbm [shape: f32[2,1,8,128], index: 5, kind: output, shape index: {1}]  }
   0x1   :  { %13 = vsyncpa [#allocation4 + $0x1], 0  ;;  %s945_s18 = smov 0   ;;  %s947_s19 = smov 0  }
   0x2   :  { %s949_s20 = smov 0   ;;  %s951_s21 = smov 0  }
   0x3   :  { %s953_s22 = smov 0   ;;  %s955_s23 = smov 0  }
   0x4 LB: > { %s743_s24 = sadd.s32 4294967295, %s911_s23   ;;  %s744_s25 = sadd.s32 4294967294, %s911_s23   ;;  %s911_s23 = sphi %s955_s23, %s19_s23   ;;  %s907_s22 = sphi %s953_s22, %s1080_s22   ;;  %s903_s21 = sphi %s951_s21, %s1079_s21   ;;  %s899_s20 = sphi %s949_s20, %s1078_s20   ;;  %s895_s19 = sphi %s947_s19, %s1077_s19   ;;  %s891_s18 = sphi %s945_s18, %s1076_s18  }
   0x5   : > { %s45_s26 = sadd.s32 1, %s907_s22  ;;  %s200_s27 = sadd.s32 1, %s899_s20 }
   0x6   : > { %p47_p0 = scmp.ge.s32.totalorder %s45_s26, 2  ;;  %p210_p1 = scmp.ne.s32.totalorder %s899_s20, %s895_s19 }
   0x7   : > { %p211_p2 = scmp.eq.s32.totalorder %s743_s24, 1  ;;  %p216_p3 = scmp.ne.s32.totalorder %s895_s19, %s891_s18 }
   0x8   : > { %s1082_s26 = smov (%p47_p0, %s45_s26), 0  ;;  %p217_p5 = scmp.eq.s32.totalorder %s744_s25, 1 }
   0x9   : > { %p985_p4 = por %p211_p2, %p210_p1  ;;  %s195_s29 = ssub.s32 %s907_s22, %s1082_s26 }
   0xa   : > { %p747_p6 = scmp.ge.s32.totalorder %s911_s23, 1  ;;  %p198_p7 = scmp.eq.s32.totalorder %s195_s29, 0 }
   0xb   : > { %p992_p8 = por %p217_p5, %p216_p3  ;;  %p284_p9 = scmp.lt.s32.totalorder %s911_s23, 3 }
   0xc   : > { %s998_s6 = scalar_select %p198_p7, %s899_s20, %s200_s27  }
   0xd   : > { %p285_p10 = pnand %p747_p6, %p284_p9 }
   0xe   : > { %p352_p11 = scmp.lt.s32.totalorder (!%p285_p10), %s903_s21, 1  ;;  %v913_v0 = vmov (!%p285_p10), 0   ;;  %vm436_vm0 = vcmask (!%p285_p10), 1042432   ;;  %vm429_vm1 = vcmask (!%p285_p10), 23552  }
   0xf   : > { %288 = sbr.rel (%p285_p10) target bundleno = 395 (0x18b), region = 36  ;;  %832 = vset.pattern.permute.xlu0 (!%p285_p10), %v913_v0 }
  0x16   : > { %s353_s7 = scalar_select %p352_p11, %s903_s21, 1 }
  0x18   : > { %s753_s8 = sshll.u32 %s353_s7, 2  ;;  %s1002_s9 = sshll.u32 %s353_s7, 4 }
  0x19   : > { %s380_s12 = scalar_lea.vmem %s1070_s2, %s753_s8  ;;  %s359_s15 = scalar_lea.vmem %s1068_s0, %s1002_s9 }
  0x1a   : > { %v417_v1 = vld [vmem:[%s380_s12] sm:$0x7]  ;;  %v412_v3 = vld [vmem:[%s359_s15 + $0x8] sm:$0xff]  ;;  %s371_s24 = scalar_lea.vmem %s1069_s1, %s1002_s9  ;;  %s386_s29 = scalar_lea.vmem %s1071_s3, %s353_s7 }
  0x1b   : > { %v411_v2 = vld [vmem:[%s359_s15] sm:$0xff]  ;;  %770 = vmatprep.subr.msk.mxu0 %vm436_vm0, %v417_v1  ;;  %v414_v5 = vmul.f32 -2.0, %v412_v3  ;;  %v416_v7 = vld [vmem:[%s371_s24 + $0x8] sm:$0xff]  ;;  %s347_s8 = sand.u32 1, %s895_s19   ;;  %s761_s12 = sshll.u32 %s903_s21, 7 }
  0x1c   : > { %v413_v4 = vmul.f32 -2.0, %v411_v2  ;;  %v415_v6 = vld [vmem:[%s371_s24] sm:$0xff]  ;;  %771 = vmatpush3.msk.msra.mxu0 %vm436_vm0, %v417_v1  ;;  %s748_s10 = sshll.u32 %s347_s8, 3  ;;  %s1023_s15 = scalar_lea.hbm %s1073_s5, %s761_s12 }
  0x1d   : > { %421 = vperm.xlu0 %832, %v415_v6   ;;  %v759_v11 = vld [vmem:[%s386_s29] ss:$0 sm:$0xff]  ;;  %s349_s11 = scalar_lea.vmem [#allocation3], %s748_s10  ;;  %s560_s16 = scalar_lea.sflag [#allocation4], %s347_s8 }
  0x1e   : > { %772 = vmatprep.mubr.msk.f32.mxu0 %vm429_vm1, %v413_v4  ;;  %s579_s13 = sshll.u32 %s349_s11, 4  ;;  %s914_s24 = smov [#allocation3]   ;;  %s580_s13 = int_to_ptr.vmem [resolvable:$true] %s579_s13 }
  0x1f   : > { %773 = vmatmul.mubr.msk.f32.vlgmr.msra.gmra.mrb[0].mxu0 %vm429_vm1, %v414_v5  ;;  %s833_s17 = scalar_lea.vmem %s580_s13, 128  ;;  %s837_s25 = sshll.u32 %s914_s24, 4  ;;  %s838_s25 = int_to_ptr.vmem [resolvable:$false] %s837_s25 }
  0x20   : > { %p834_p12 = scmp.ne.s32.totalorder %s580_s13, %s833_s17  ;;  %s839_s27 = scalar_lea.vmem %s838_s25, 256 }
  0x21   : > { %426 = vperm.xlu0 %832, %v416_v7   ;;  %p840_p1 = scmp.lt.s32.totalorder %s580_s13, %s838_s25  ;;  %p841_p2 = scmp.lt.s32.totalorder %s839_s27, %s833_s17 }
  0x22   : > { %p835_p13 = pnand %p834_p12, %p985_p4 }
  0x23   : > { %p842_p3 = por %p841_p2, %p840_p1 }
  0x24   : > { %p836_p0 = pneg %p835_p13 }
  0x26   : > { %p843_p5 = pnand %p842_p3, %p836_p0 }
  0x9c   : > { %v422_v8 = vpop.permute.xlu0 %421 }
  0xa0   : > { %v427_v9 = vpop.permute.xlu0 %426 }
  0xf2   : > { %v774_v10 = vpop.f32.mrb[0].mxu0 }
  0xf3   : > { %v512_v12 = vadd.f32 %v774_v10, %v427_v9  ;;  %v506_v13 = vpop.f32.mrb[1].mxu0 }
  0xf4   : > { %v507_v14 = vadd.f32 %v506_v13, %v422_v8 }
  0xf5   : > { %v522_v15 = vadd.f32 %v759_v11, %v512_v12 }
  0xf6   : > { %v521_v16 = vadd.f32 %v759_v11, %v507_v14 }
  0xf8   : > { %542 = vmin.xlane.f32.xlu1 %v521_v16  ;;  %v529_v17 = vmin.f32 %v521_v16, %v522_v15 }
  0xfa   : > { %536 = vst [vmem:[%s349_s11] sm:$0xff] %v529_v17 }
  0xfc   : > { %544 = vmin.xlane.f32.xlu1 %v522_v15 }
  0xfd   : > { %846 = shalt.err (!%p843_p5)
}
  0xfe   : > { %s847_s21 = scalar_lea.hbm %s1023_s15, 128  ;;  %s851_s10 = scalar_lea.hbm %s1073_s5, 256 }
  0xff   : > { %p848_p6 = scmp.ne.s32.totalorder %s1023_s15, %s847_s21  ;;  %p852_p10 = scmp.lt.u32.totalorder %s1023_s15, %s1073_s5 }
 0x100   : > { %p853_p11 = scmp.lt.u32.totalorder %s851_s10, %s847_s21  ;;  %p855_p13 = scmp.lt.u32.totalorder %s847_s21, %s1023_s15 }
 0x101   : > { %p849_p7 = pnand %p848_p6, %p985_p4 }
 0x102   : > { %p854_p12 = por %p853_p11, %p852_p10 }
 0x103   : > { %p850_p9 = pneg %p849_p7 }
 0x104   : > { %p856_p0 = por %p855_p13, %p854_p12 }
 0x106   : > { %p857_p1 = pnand %p856_p0, %p850_p9 }
 0x108   : > { %860 = shalt.err (!%p857_p1)
}
 0x109   : > { %775 = dma.vmem_to_hbm [thread:$0]  (%p985_p4), %s580_s13, 128, %s1023_s15, %s560_s16   ;;  %vm546_vm2 = vcmask 7168  }
 0x10a   : > { %s396_s17 = scalar_lea.vmem %s1072_s4, %s1002_s9 }
 0x185   : > { %v543_v18 = vpop.xlane.xlu1 %542 }
 0x186   : > { %547 = vst.msk [vmem:[%s396_s17] sm:$0xff] %vm546_vm2, %v543_v18 }
 0x189   : > { %v545_v19 = vpop.xlane.xlu1 %544 }
 0x18a   : > { %548 = vst.msk [vmem:[%s396_s17 + $0x8] sm:$0xff] %vm546_vm2, %v545_v19 }
 0x18b PF: > { %p781_p2 = scmp.ge.s32.totalorder %s911_s23, 2  ;;  %s604_s24 = sand.u32 1, %s891_s18  }
 0x18c   : > { %s605_s28 = scalar_lea.sflag [#allocation4], %s604_s24 }
 0x18d   : > { %p778_p3 = pnand %p781_p2, %p992_p8 }
 0x18f   : > { %886 = dma.done.wait (!%p778_p3), %s605_s28, 128  }
 0x190   : > { %888 = vsyncadd (!%p778_p3), %s605_s28, 4294967168  ;;  %s19_s23 = sadd.s32 1, %s911_s23   ;;  %s1076_s18 = smov %s895_s19 }
 0x191   : > { %p16_p4 = scmp.ge.s32.totalorder %s19_s23, 4   ;;  %s1077_s19 = smov %s899_s20 }
 0x192   : > { %s1078_s20 = smov %s998_s6  ;;  %s1079_s21 = smov %s907_s22 }
 0x193   : > { %s1080_s22 = smov %s1082_s26  ;;  %18 = sbr.rel (!%p16_p4) target bundleno = 4 (0x4), region = 105 }
 0x19a   :  { %610 = vsyncpa [#allocation4], 1 }
 0x19b   :  { %612 = vsyncpa [#allocation4 + $0x1], 1 }

</bundles_post_ra>
